<compile_context>
chip_gen: v5e
topology: v5e:2x2
jax: 0.10.0
libtpu: 0.0.40
codegen_flags: <defaults>
</compile_context>

<pallas_src>
import functools
import math

import jax
import jax.numpy as jnp
from jax.experimental import pallas as pl
from jax.experimental.pallas import tpu as pltpu

LANE = 128


def _round_up(x, m):
    return ((x + m - 1) // m) * m


# ----------------------------- fused Pallas kernel ---------------------------

def _fused_tower_kernel(*refs, n_tail):
    """refs = [wg, sg, le, oe, Ww, Ws, Wl, Wo, b1, (W_i, b_i)*n_tail, out]."""
    (wg_ref, sg_ref, le_ref, oe_ref,
     ww_ref, ws_ref, wl_ref, wo_ref, b1_ref) = refs[:9]
    tail = refs[9:9 + 2 * n_tail]
    o_ref = refs[9 + 2 * n_tail]

    # Layer 1: sum-pool + concat + Linear folded into 4 MXU matmuls.
    # (weight blocks are pre-tiled so x_flat @ tile(W,(L,1)) == sum_pool(x) @ W)
    h = jnp.dot(wg_ref[...], ww_ref[...], preferred_element_type=jnp.float32)
    h = h + jnp.dot(sg_ref[...], ws_ref[...], preferred_element_type=jnp.float32)
    h = h + jnp.dot(le_ref[...], wl_ref[...], preferred_element_type=jnp.float32)
    h = h + jnp.dot(oe_ref[...], wo_ref[...], preferred_element_type=jnp.float32)
    h = jnp.maximum(h + b1_ref[...], 0.0)

    # Remaining layers: Linear + bias + ReLU, activations stay on-chip.
    for i in range(n_tail):
        w_ref, b_ref = tail[2 * i], tail[2 * i + 1]
        h = jnp.dot(h, w_ref[...], preferred_element_type=jnp.float32)
        h = jnp.maximum(h + b_ref[...], 0.0)

    o_ref[...] = h.astype(o_ref.dtype)


def fused_tower(wg_flat, sg_flat, le, oe, kparams):
    """Run the whole tower in a single pallas_call.  Returns padded (B, Dlast_pad)."""
    B = wg_flat.shape[0]
    tail = kparams["tail"]
    n_tail = len(tail)

    inputs = [wg_flat, sg_flat, le, oe,
              kparams["ww"], kparams["ws"], kparams["wl"], kparams["wo"], kparams["b1"]]
    for w, b in tail:
        inputs += [w, b]

    kernel = functools.partial(_fused_tower_kernel, n_tail=n_tail)
    return pl.pallas_call(
        kernel,
        out_shape=jax.ShapeDtypeStruct((B, kparams["d_out_pad"]), jnp.float32),
        in_specs=[pl.BlockSpec(memory_space=pltpu.MemorySpace.VMEM)] * len(inputs),
        out_specs=pl.BlockSpec(memory_space=pltpu.MemorySpace.VMEM),
    )(*inputs)


# ----------------------------- parameter setup -------------------------------

def init_params(key, n_items, n_tokens, n_locations, n_occupations,
                watch_emb_dim, search_emb_dim, loc_emb_dim, ocp_emb_dim, layers):
    keys = jax.random.split(key, 4 + 2 * (len(layers) - 1))
    params = {}
    # Embeddings: normal(0, 0.01), matching _init_weights.
    params["watch_emb"] = 0.01 * jax.random.normal(keys[0], (n_items, watch_emb_dim), jnp.float32)
    params["search_emb"] = 0.01 * jax.random.normal(keys[1], (n_tokens, search_emb_dim), jnp.float32)
    params["loc_emb"] = 0.01 * jax.random.normal(keys[2], (n_locations, loc_emb_dim), jnp.float32)
    params["ocp_emb"] = 0.01 * jax.random.normal(keys[3], (n_occupations, ocp_emb_dim), jnp.float32)
    # Dnn linears: kaiming_uniform on weight (bound = sqrt(6 / fan_in)), zero bias.
    ws, bs = [], []
    for i in range(len(layers) - 1):
        fan_in, fan_out = layers[i], layers[i + 1]
        bound = math.sqrt(6.0 / fan_in)
        w = jax.random.uniform(keys[4 + 2 * i], (fan_in, fan_out), jnp.float32,
                               minval=-bound, maxval=bound)
        b = jnp.zeros((1, fan_out), jnp.float32)
        ws.append(w)
        bs.append(b)
    params["dnn_w"] = ws    # stored as [D_in, D_out] (transposed vs torch [out, in])
    params["dnn_b"] = bs
    return params


def prepare_kernel_params(params, n_watch, n_search):
    """Pre-tile / zero-pad weights to a lane-dense, pool-folded kernel layout."""
    We = params["watch_emb"].shape[1]
    Se = params["search_emb"].shape[1]
    Le = params["loc_emb"].shape[1]
    Oe = params["ocp_emb"].shape[1]
    ws_list, bs_list = params["dnn_w"], params["dnn_b"]

    w1 = ws_list[0]                      # (We+Se+Le+Oe, D1)
    d1 = w1.shape[1]
    d1p = _round_up(d1, LANE)

    def pad_cols(a, target):
        return jnp.pad(a, ((0, 0), (0, target - a.shape[1])))

    w_w = w1[:We]
    w_s = w1[We:We + Se]
    w_l = w1[We + Se:We + Se + Le]
    w_o = w1[We + Se + Le:]

    kp = {
        # sum-pool folded into the matmul: tile the watch/search blocks L times.
        "ww": pad_cols(jnp.tile(w_w, (n_watch, 1)), d1p),   # (n_watch*We, D1p)
        "ws": pad_cols(jnp.tile(w_s, (n_search, 1)), d1p),  # (n_search*Se, D1p)
        "wl": pad_cols(w_l, d1p),                           # (Le, D1p)
        "wo": pad_cols(w_o, d1p),                           # (Oe, D1p)
        "b1": pad_cols(bs_list[0], d1p),                    # (1, D1p)
    }

    tail = []
    prev_pad = d1p
    for w, b in zip(ws_list[1:], bs_list[1:]):
        din, dout = w.shape
        dout_p = _round_up(dout, LANE)
        w_p = jnp.pad(w, ((0, prev_pad - din), (0, dout_p - dout)))  # zero rows/cols: exact
        b_p = pad_cols(b, dout_p)
        tail.append((w_p, b_p))
        prev_pad = dout_p
    kp["tail"] = tail
    kp["d_out"] = ws_list[-1].shape[1]
    kp["d_out_pad"] = prev_pad
    return kp


# ----------------------------- forward pass ----------------------------------

def candidate_generation_forward(params, kparams, input_feature, n_watch, n_search):
    """input_feature: int32 [B, 1 + n_watch + n_search + 3]
       = [user_id | watch ids | search ids | location | gender | occupation]."""
    B = input_feature.shape[0]
    watch_ids = input_feature[:, 1:1 + n_watch]                         # (B, n_watch)
    search_ids = input_feature[:, 1 + n_watch:1 + n_watch + n_search]   # (B, n_search)
    location = input_feature[:, 1 + n_watch + n_search]                 # (B,)
    occupation = input_feature[:, 1 + n_watch + n_search + 2]           # (B,)

    # Embedding gathers (glue).
    # TODO(synk): for large tables, gather via PrefetchScalarGridSpec / manual DMA
    #             instead of materializing gathered rows through HBM.
    wg = jnp.take(params["watch_emb"], watch_ids, axis=0).reshape(B, -1)    # (B, n_watch*We)
    sg = jnp.take(params["search_emb"], search_ids, axis=0).reshape(B, -1)  # (B, n_search*Se)
    le = jnp.take(params["loc_emb"], location, axis=0)                      # (B, Le)
    oe = jnp.take(params["ocp_emb"], occupation, axis=0)                    # (B, Oe)

    # Whole tower (pool + concat + all Linear+ReLU) in one Pallas kernel.
    # TODO(synk): training-mode Dropout omitted (inference semantics: identity).
    out_pad = fused_tower(wg, sg, le, oe, kparams)
    return out_pad[:, :kparams["d_out"]]


# ----------------------------- demo ------------------------------------------

if __name__ == "__main__":
    # Small, module-consistent shapes.
    n_items, n_tokens, n_locations, n_occupations = 100, 50, 10, 8
    watch_emb_dim, search_emb_dim, loc_emb_dim, ocp_emb_dim = 16, 16, 8, 8
    n_watch, n_search = 4, 4
    B = 8
    d_in = watch_emb_dim + search_emb_dim + loc_emb_dim + ocp_emb_dim   # 48
    layers = [d_in, 64, 32]

    key = jax.random.PRNGKey(0)
    pkey, ikey = jax.random.split(key)
    params = init_params(pkey, n_items, n_tokens, n_locations, n_occupations,
                         watch_emb_dim, search_emb_dim, loc_emb_dim, ocp_emb_dim, layers)
    kparams = prepare_kernel_params(params, n_watch, n_search)

    # Build the int32 categorical input row: [user_id | watch | search | loc | gender | ocp]
    k1, k2, k3, k4, k5, k6 = jax.random.split(ikey, 6)
    user_id = jax.random.randint(k1, (B, 1), 0, 1000)
    watch_ids = jax.random.randint(k2, (B, n_watch), 0, n_items)
    search_ids = jax.random.randint(k3, (B, n_search), 0, n_tokens)
    location = jax.random.randint(k4, (B, 1), 0, n_locations)
    gender = jax.random.randint(k5, (B, 1), 0, 2)
    occupation = jax.random.randint(k6, (B, 1), 0, n_occupations)
    input_feature = jnp.concatenate(
        [user_id, watch_ids, search_ids, location, gender, occupation], axis=-1
    ).astype(jnp.int32)

    user_vectors = candidate_generation_forward(params, kparams, input_feature,
                                                n_watch, n_search)
    user_vectors = jax.block_until_ready(user_vectors)
    assert user_vectors.shape == (B, layers[-1])

    # Reference check against plain-JAX pooled/concat/MLP semantics.
    wg_r = jnp.take(params["watch_emb"], input_feature[:, 1:1 + n_watch], axis=0).sum(1)
    sg_r = jnp.take(params["search_emb"],
                    input_feature[:, 1 + n_watch:1 + n_watch + n_search], axis=0).sum(1)
    le_r = jnp.take(params["loc_emb"], input_feature[:, 1 + n_watch + n_search], axis=0)
    oe_r = jnp.take(params["ocp_emb"], input_feature[:, 1 + n_watch + n_search + 2], axis=0)
    x_r = jnp.concatenate([wg_r, sg_r, le_r, oe_r], axis=-1)
    for w, b in zip(params["dnn_w"], params["dnn_b"]):
        x_r = jnp.maximum(x_r @ w + b, 0.0)
    assert jnp.allclose(user_vectors, x_r, atol=1e-5, rtol=1e-5)

    print("KERNEL_OK")
</pallas_src>

<mosaic_0001>
module attributes {stable_mosaic.version = 11 : i64} {
  func.func @_fused_tower_kernel(%arg0: memref<8x64xf32, #tpu.memory_space<vmem>>, %arg1: memref<8x64xf32, #tpu.memory_space<vmem>>, %arg2: memref<8x8xf32, #tpu.memory_space<vmem>>, %arg3: memref<8x8xf32, #tpu.memory_space<vmem>>, %arg4: memref<64x128xf32, #tpu.memory_space<vmem>>, %arg5: memref<64x128xf32, #tpu.memory_space<vmem>>, %arg6: memref<8x128xf32, #tpu.memory_space<vmem>>, %arg7: memref<8x128xf32, #tpu.memory_space<vmem>>, %arg8: memref<1x128xf32, #tpu.memory_space<vmem>>, %arg9: memref<128x128xf32, #tpu.memory_space<vmem>>, %arg10: memref<1x128xf32, #tpu.memory_space<vmem>>, %arg11: memref<8x128xf32, #tpu.memory_space<vmem>>) attributes {dimension_semantics = [], scalar_prefetch = 0 : i64, scratch_operands = 0 : i64, tpu.core_type = #tpu.core_type<tc>} {
    %c0 = arith.constant 0 : index
    %c0_0 = arith.constant 0 : index
    %0 = vector.load %arg0[%c0, %c0_0] : memref<8x64xf32, #tpu.memory_space<vmem>>, vector<8x64xf32>
    %c0_1 = arith.constant 0 : index
    %c0_2 = arith.constant 0 : index
    %1 = vector.load %arg4[%c0_1, %c0_2] : memref<64x128xf32, #tpu.memory_space<vmem>>, vector<64x128xf32>
    %cst = arith.constant dense<0.000000e+00> : vector<8x128xf32>
    %2 = tpu.matmul %0, %1, %cst {dimension_numbers = #tpu.dot_dimension_numbers<[1], [0], [0], [1], [0, 0, 1, 1], [], []>} : vector<8x64xf32>, vector<64x128xf32>, vector<8x128xf32> -> vector<8x128xf32>
    %c0_3 = arith.constant 0 : index
    %c0_4 = arith.constant 0 : index
    %3 = vector.load %arg1[%c0_3, %c0_4] : memref<8x64xf32, #tpu.memory_space<vmem>>, vector<8x64xf32>
    %c0_5 = arith.constant 0 : index
    %c0_6 = arith.constant 0 : index
    %4 = vector.load %arg5[%c0_5, %c0_6] : memref<64x128xf32, #tpu.memory_space<vmem>>, vector<64x128xf32>
    %cst_7 = arith.constant dense<0.000000e+00> : vector<8x128xf32>
    %5 = tpu.matmul %3, %4, %cst_7 {dimension_numbers = #tpu.dot_dimension_numbers<[1], [0], [0], [1], [0, 0, 1, 1], [], []>} : vector<8x64xf32>, vector<64x128xf32>, vector<8x128xf32> -> vector<8x128xf32>
    %6 = arith.addf %2, %5 : vector<8x128xf32>
    %c0_8 = arith.constant 0 : index
    %c0_9 = arith.constant 0 : index
    %7 = vector.load %arg2[%c0_8, %c0_9] : memref<8x8xf32, #tpu.memory_space<vmem>>, vector<8x8xf32>
    %c0_10 = arith.constant 0 : index
    %c0_11 = arith.constant 0 : index
    %8 = vector.load %arg6[%c0_10, %c0_11] : memref<8x128xf32, #tpu.memory_space<vmem>>, vector<8x128xf32>
    %cst_12 = arith.constant dense<0.000000e+00> : vector<8x128xf32>
    %9 = tpu.matmul %7, %8, %cst_12 {dimension_numbers = #tpu.dot_dimension_numbers<[1], [0], [0], [1], [0, 0, 1, 1], [], []>} : vector<8x8xf32>, vector<8x128xf32>, vector<8x128xf32> -> vector<8x128xf32>
    %10 = arith.addf %6, %9 : vector<8x128xf32>
    %c0_13 = arith.constant 0 : index
    %c0_14 = arith.constant 0 : index
    %11 = vector.load %arg3[%c0_13, %c0_14] : memref<8x8xf32, #tpu.memory_space<vmem>>, vector<8x8xf32>
    %c0_15 = arith.constant 0 : index
    %c0_16 = arith.constant 0 : index
    %12 = vector.load %arg7[%c0_15, %c0_16] : memref<8x128xf32, #tpu.memory_space<vmem>>, vector<8x128xf32>
    %cst_17 = arith.constant dense<0.000000e+00> : vector<8x128xf32>
    %13 = tpu.matmul %11, %12, %cst_17 {dimension_numbers = #tpu.dot_dimension_numbers<[1], [0], [0], [1], [0, 0, 1, 1], [], []>} : vector<8x8xf32>, vector<8x128xf32>, vector<8x128xf32> -> vector<8x128xf32>
    %14 = arith.addf %10, %13 : vector<8x128xf32>
    %c0_18 = arith.constant 0 : index
    %c0_19 = arith.constant 0 : index
    %15 = vector.load %arg8[%c0_18, %c0_19] : memref<1x128xf32, #tpu.memory_space<vmem>>, vector<1x128xf32>
    %16 = vector.broadcast %15 : vector<1x128xf32> to vector<8x128xf32>
    %17 = arith.addf %14, %16 : vector<8x128xf32>
    %cst_20 = arith.constant 0.000000e+00 : f32
    %18 = vector.broadcast %cst_20 : f32 to vector<8x128xf32>
    %19 = arith.maximumf %17, %18 : vector<8x128xf32>
    %c0_21 = arith.constant 0 : index
    %c0_22 = arith.constant 0 : index
    %20 = vector.load %arg9[%c0_21, %c0_22] : memref<128x128xf32, #tpu.memory_space<vmem>>, vector<128x128xf32>
    %cst_23 = arith.constant dense<0.000000e+00> : vector<8x128xf32>
    %21 = tpu.matmul %19, %20, %cst_23 {dimension_numbers = #tpu.dot_dimension_numbers<[1], [0], [0], [1], [0, 0, 1, 1], [], []>} : vector<8x128xf32>, vector<128x128xf32>, vector<8x128xf32> -> vector<8x128xf32>
    %c0_24 = arith.constant 0 : index
    %c0_25 = arith.constant 0 : index
    %22 = vector.load %arg10[%c0_24, %c0_25] : memref<1x128xf32, #tpu.memory_space<vmem>>, vector<1x128xf32>
    %23 = vector.broadcast %22 : vector<1x128xf32> to vector<8x128xf32>
    %24 = arith.addf %21, %23 : vector<8x128xf32>
    %cst_26 = arith.constant 0.000000e+00 : f32
    %25 = vector.broadcast %cst_26 : f32 to vector<8x128xf32>
    %26 = arith.maximumf %24, %25 : vector<8x128xf32>
    %c0_27 = arith.constant 0 : index
    %c0_28 = arith.constant 0 : index
    %27 = vector.load %arg11[%c0_27, %c0_28] : memref<8x128xf32, #tpu.memory_space<vmem>>, vector<8x128xf32>
    tpu.vector_store %arg11[%c0_27, %c0_28], %26 {strides = array<i32>} : memref<8x128xf32, #tpu.memory_space<vmem>>, vector<8x128xf32>,
    return
  }
}

</mosaic_0001>

<bundles_post_ra>
// kernel: tpu_custom_call.1
= control target key start
LH: loop header
LB: loop body
LE: loop exit
PB: predicated region body
PF: predicated region fallthrough
CT: control target
= control target key end

     0   :  { %16 = vsyncpa [#allocation3], 0  ;;  %s743_s0 = inlined_call_operand.hbm [shape: f32[8,64], index: 0, kind: input, shape index: {}]   ;;  %s744_s1 = inlined_call_operand.hbm [shape: f32[8,64], index: 1, kind: input, shape index: {}]   ;;  %s745_s2 = inlined_call_operand.hbm [shape: f32[8,8], index: 2, kind: input, shape index: {}]   ;;  %s746_s3 = inlined_call_operand.hbm [shape: f32[8,8], index: 3, kind: input, shape index: {}]   ;;  %s747_s4 = inlined_call_operand.hbm [shape: f32[64,128], index: 4, kind: input, shape index: {}]   ;;  %s748_s5 = inlined_call_operand.hbm [shape: f32[64,128], index: 5, kind: input, shape index: {}]   ;;  %s749_s6 = inlined_call_operand.hbm [shape: f32[8,128], index: 6, kind: input, shape index: {}]   ;;  %s750_s7 = inlined_call_operand.hbm [shape: f32[8,128], index: 7, kind: input, shape index: {}]   ;;  %s751_s8 = inlined_call_operand.vmem [shape: f32[1,128], index: 8, kind: input, shape index: {}]   ;;  %s752_s9 = inlined_call_operand.hbm [shape: f32[128,128], index: 9, kind: input, shape index: {}]   ;;  %s753_s10 = inlined_call_operand.vmem [shape: f32[1,128], index: 10, kind: input, shape index: {}]   ;;  %s754_s11 = inlined_call_operand.hbm [shape: f32[8,128], index: 11, kind: output, shape index: {}]  }
   0x1   :  { %17 = vsyncpa [#allocation6], 0 }
   0x2   :  { %18 = vsyncpa [#allocation9], 0 }
   0x3   :  { %19 = vsyncpa [#allocation12], 0 }
   0x4   :  { %20 = vsyncpa [#allocation15], 0  ;;  %s38_s19 = sshll.u32 %s744_s1, 4  ;;  %s39_s19 = int_to_ptr.hbm [resolvable:$true] %s38_s19 }
   0x5   :  { %21 = vsyncpa [#allocation4], 0  ;;  %s624_s20 = smov [#allocation5]   ;;  %s60_s24 = sshll.u32 %s746_s3, 4  ;;  %s61_s24 = int_to_ptr.hbm [resolvable:$true] %s60_s24 }
   0x6   :  { %s40_s21 = sshll.u32 %s624_s20, 4  ;;  %s625_s25 = smov [#allocation8]   ;;  %s41_s21 = int_to_ptr.vmem [resolvable:$true] %s40_s21 }
   0x7   :  { %43 = dma.hbm_to_vmem [thread:$0]  %s39_s19, 128, %s41_s21, [#allocation6]  }
   0x8   :  { %s62_s26 = sshll.u32 %s625_s25, 4  ;;  %s83_s29 = sshll.u32 %s748_s5, 4  ;;  %s63_s26 = int_to_ptr.vmem [resolvable:$true] %s62_s26  ;;  %s84_s29 = int_to_ptr.hbm [resolvable:$true] %s83_s29 }
   0x9   :  { %65 = dma.hbm_to_vmem [thread:$0]  %s61_s24, 128, %s63_s26, [#allocation9]  }
   0xa   :  { %s626_s1 = smov [#allocation11]   ;;  %s108_s14 = sshll.u32 %s750_s7, 4  ;;  %s109_s14 = int_to_ptr.hbm [resolvable:$true] %s108_s14 }
   0xb   :  { %s85_s30 = sshll.u32 %s626_s1, 4  ;;  %s627_s15 = smov 128   ;;  %s86_s30 = int_to_ptr.vmem [resolvable:$true] %s85_s30 }
   0xc   :  { %s628_s3 = smov 8   ;;  %s629_s16 = smov [#allocation14]  }
   0xd   :  { %91 = dma.hbm_to_vmem [thread:$0]  %s84_s29, 1024, %s86_s30, [#allocation12], %s627_s15, %s627_s15, %s628_s3  }
   0xe   :  { %s110_s17 = sshll.u32 %s629_s16, 4  ;;  %s27_s5 = sshll.u32 %s743_s0, 4  ;;  %s111_s17 = int_to_ptr.vmem [resolvable:$true] %s110_s17  ;;  %s28_s5 = int_to_ptr.hbm [resolvable:$true] %s27_s5 }
   0xf   :  { %113 = dma.hbm_to_vmem [thread:$0]  %s109_s14, 128, %s111_s17, [#allocation15]  }
  0x10   :  { %s49_s7 = sshll.u32 %s745_s2, 4  ;;  %s630_s22 = smov [#allocation2]   ;;  %s50_s7 = int_to_ptr.hbm [resolvable:$true] %s49_s7 }
  0x11   :  { %s29_s23 = sshll.u32 %s630_s22, 4  ;;  %s631_s24 = smov [#allocation7]   ;;  %s30_s23 = int_to_ptr.vmem [resolvable:$true] %s29_s23 }
  0x12   :  { %32 = dma.hbm_to_vmem [thread:$0]  %s28_s5, 128, %s30_s23, [#allocation3]  }
  0x13   :  { %s51_s25 = sshll.u32 %s631_s24, 4  ;;  %s70_s28 = sshll.u32 %s747_s4, 4  ;;  %s52_s25 = int_to_ptr.vmem [resolvable:$true] %s51_s25  ;;  %s71_s28 = int_to_ptr.hbm [resolvable:$true] %s70_s28 }
  0x14   :  { %54 = dma.hbm_to_vmem [thread:$0]  %s50_s7, 128, %s52_s25, [#allocation6]  }
  0x15   :  { %s97_s1 = sshll.u32 %s749_s6, 4  ;;  %s632_s30 = smov [#allocation10]   ;;  %s98_s1 = int_to_ptr.hbm [resolvable:$true] %s97_s1 }
  0x16   :  { %s72_s2 = sshll.u32 %s632_s30, 4  ;;  %s633_s12 = smov [#allocation13]   ;;  %s73_s2 = int_to_ptr.vmem [resolvable:$true] %s72_s2 }
  0x17   :  { %78 = dma.hbm_to_vmem [thread:$0]  %s71_s28, 1024, %s73_s2, [#allocation9], %s627_s15, %s627_s15, %s628_s3  }
  0x18   :  { %s99_s13 = sshll.u32 %s633_s12, 4  ;;  %s120_s4 = sshll.u32 %s752_s9, 4  ;;  %s100_s13 = int_to_ptr.vmem [resolvable:$true] %s99_s13  ;;  %s121_s4 = int_to_ptr.hbm [resolvable:$true] %s120_s4 }
  0x19   :  { %102 = dma.hbm_to_vmem [thread:$0]  %s98_s1, 128, %s100_s13, [#allocation12]  }
  0x1a   :  { %s634_s17 = smov [#allocation16]  }
  0x1b   :  { %s122_s18 = sshll.u32 %s634_s17, 4  ;;  %s123_s18 = int_to_ptr.vmem [resolvable:$true] %s122_s18 }
  0x1c   :  { %128 = dma.hbm_to_vmem [thread:$0]  %s121_s4, 2048, %s123_s18, [#allocation15], %s627_s15, %s627_s15, %s628_s3  }
  0x1d   :  { %612 = dma.done.wait [#allocation3], 128  }
  0x1e   :  { %613 = vsyncadd [#allocation3], 4294967168 }
  0x1f   :  { %614 = dma.done.wait [#allocation6], 256  }
  0x20   :  { %615 = vsyncadd [#allocation6], 4294967040 }
  0x21   :  { %616 = dma.done.wait [#allocation9], 1152  }
  0x22   :  { %617 = vsyncadd [#allocation9], 4294966144 }
  0x23   :  { %618 = dma.done.wait [#allocation12], 1152  }
  0x24   :  { %619 = vsyncadd [#allocation12], 4294966144 }
  0x25   :  { %620 = dma.done.wait [#allocation15], 2176  }
  0x26   :  { %621 = vsyncadd [#allocation15], 4294965120  ;;  %v184_v0 = vld [vmem:[#allocation11 + $0x38] sm:$0xff]  ;;  %v183_v2 = vld [vmem:[#allocation11 + $0x30] sm:$0xff]  ;;  %vm234_vm0 = vcmask 64512   ;;  %vm185_vm1 = vcmask 523264  }
  0x27   :  { %v175_v1 = vld [vmem:[#allocation10 + $0x38] sm:$0xff]  ;;  %197 = vmatpush.msra.mxu0 %v184_v0  ;;  %v174_v3 = vld [vmem:[#allocation10 + $0x30] sm:$0xff]  ;;  %v182_v4 = vld [vmem:[#allocation11 + $0x28] sm:$0xff]  ;;  %s635_s19 = smov [#allocation17]   ;;  %s340_s7 = sshll.u32 %s754_s11, 4  ;;  %s341_s7 = int_to_ptr.hbm [resolvable:$true] %s340_s7 }
  0x28   :  { %220 = vmatpush.msra.mxu1 %v175_v1  ;;  %v173_v5 = vld [vmem:[#allocation10 + $0x28] sm:$0xff]  ;;  %v233_v6 = vld [vmem:[#allocation13] sm:$0xff]  ;;  %v232_v7 = vld [vmem:[#allocation7] sm:$0xff]  ;;  %s338_s5 = sshll.u32 %s635_s19, 4  ;;  %s339_s5 = int_to_ptr.vmem [resolvable:$true] %s338_s5 }
  0x29   :  { %198 = vmatpush.msra.mxu0 %v183_v2  ;;  %253 = vmatpush.msra.mxu3 %v233_v6  ;;  %v260_v8 = vld [vmem:[#allocation14] sm:$0xff]  ;;  %v181_v9 = vld [vmem:[#allocation11 + $0x20] sm:$0xff]  ;;  %v180_v11 = vld [vmem:[#allocation11 + $0x18] sm:$0xff] }
  0x2a   :  { %221 = vmatpush.msra.mxu1 %v174_v3  ;;  %v172_v10 = vld [vmem:[#allocation10 + $0x20] sm:$0xff]  ;;  %356 = vmatmul.msk.f32.vlgmr.msra.gmra.mxu3 %vm234_vm0, %v232_v7  ;;  %v171_v12 = vld [vmem:[#allocation10 + $0x18] sm:$0xff]  ;;  %v306_v13 = vld [vmem:[#allocation16 + $0x78] sm:$0xff] }
  0x2b   :  { %199 = vmatpush.msra.mxu0 %v182_v4  ;;  %279 = vmatpush.msrb.mxu3 %v260_v8  ;;  %v305_v14 = vld [vmem:[#allocation16 + $0x70] sm:$0xff]  ;;  %v179_v15 = vld [vmem:[#allocation11 + $0x10] sm:$0xff]  ;;  %v304_v17 = vld [vmem:[#allocation16 + $0x68] sm:$0xff] }
  0x2c   :  { %222 = vmatpush.msra.mxu1 %v173_v5  ;;  %311 = vmatpush.msra.mxu2 %v306_v13  ;;  %v170_v16 = vld [vmem:[#allocation10 + $0x10] sm:$0xff]  ;;  %v178_v18 = vld [vmem:[#allocation11 + $0x8] sm:$0xff]  ;;  %v259_v20 = vld [vmem:[#allocation8] sm:$0xff] }
  0x2d   :  { %200 = vmatpush.msra.mxu0 %v181_v9  ;;  %v169_v19 = vld [vmem:[#allocation10 + $0x8] sm:$0xff]  ;;  %v177_v21 = vld [vmem:[#allocation11] sm:$0xff]  ;;  %v303_v22 = vld [vmem:[#allocation16 + $0x60] sm:$0xff] }
  0x2e   :  { %223 = vmatpush.msra.mxu1 %v172_v10  ;;  %312 = vmatpush.msra.mxu2 %v305_v14  ;;  %v168_v23 = vld [vmem:[#allocation10] sm:$0xff]  ;;  %v176_v24 = vld [vmem:[#allocation5] sm:$0xff]  ;;  %v300_v28 = vld [vmem:[#allocation16 + $0x48] sm:$0xff] }
  0x2f   :  { %201 = vmatpush.msra.mxu0 %v180_v11  ;;  %v167_v25 = vld [vmem:[#allocation2] sm:$0xff]  ;;  %v302_v26 = vld [vmem:[#allocation16 + $0x58] sm:$0xff]  ;;  %v299_v29 = vld [vmem:[#allocation16 + $0x40] sm:$0xff] }
  0x30   :  { %224 = vmatpush.msra.mxu1 %v171_v12  ;;  %313 = vmatpush.msra.mxu2 %v304_v17  ;;  %v301_v27 = vld [vmem:[#allocation16 + $0x50] sm:$0xff]  ;;  %v298_v30 = vld [vmem:[#allocation16 + $0x38] sm:$0xff]  ;;  %v296_v32 = vld [vmem:[#allocation16 + $0x28] sm:$0xff] }
  0x31   :  { %202 = vmatpush.msra.mxu0 %v179_v15  ;;  %v297_v31 = vld [vmem:[#allocation16 + $0x30] sm:$0xff]  ;;  %v295_v33 = vld [vmem:[#allocation16 + $0x20] sm:$0xff]  ;;  %v294_v34 = vld [vmem:[#allocation16 + $0x18] sm:$0xff] }
  0x32   :  { %225 = vmatpush.msra.mxu1 %v170_v16  ;;  %357 = vmatmul.msk.f32.vlgmr.msrb.gmra.mxu3 %vm234_vm0, %v259_v20  ;;  %v293_v35 = vld [vmem:[#allocation16 + $0x10] sm:$0xff]  ;;  %v292_v36 = vld [vmem:[#allocation16 + $0x8] sm:$0xff]  ;;  %v291_v37 = vld [vmem:[#allocation16] sm:$0xff] }
  0x33   :  { %203 = vmatpush.msra.mxu0 %v178_v18  ;;  %314 = vmatpush.msra.mxu2 %v303_v22  ;;  %v370_v44 = vld [vmem:[%s751_s8] ss:$0 sm:$0xff] }
  0x34   :  { %226 = vmatpush.msra.mxu1 %v169_v19  ;;  %v371_v48 = vld [vmem:[%s753_s10] ss:$0 sm:$0xff] }
  0x35   :  { %204 = vmatpush.msra.mxu0 %v177_v21  ;;  %315 = vmatpush.msra.mxu2 %v302_v26 }
  0x36   :  { %227 = vmatpush.msra.mxu1 %v168_v23  ;;  %354 = vmatmul.msk.f32.vlgmr.msra.gmra.mxu0 %vm185_vm1, %v176_v24 }
  0x37   :  { %355 = vmatmul.msk.f32.vlgmr.msra.gmra.mxu1 %vm185_vm1, %v167_v25  ;;  %316 = vmatpush.msra.mxu2 %v301_v27 }
  0x39   :  { %317 = vmatpush.msra.mxu2 %v300_v28 }
  0x3b   :  { %318 = vmatpush.msra.mxu2 %v299_v29 }
  0x3d   :  { %319 = vmatpush.msra.mxu2 %v298_v30 }
  0x3f   :  { %320 = vmatpush.msra.mxu2 %v297_v31 }
  0x41   :  { %321 = vmatpush.msra.mxu2 %v296_v32 }
  0x43   :  { %322 = vmatpush.msra.mxu2 %v295_v33 }
  0x45   :  { %323 = vmatpush.msra.mxu2 %v294_v34 }
  0x47   :  { %324 = vmatpush.msra.mxu2 %v293_v35 }
  0x49   :  { %325 = vmatpush.msra.mxu2 %v292_v36 }
  0x4b   :  { %326 = vmatpush.msra.mxu2 %v291_v37 }
  0xad   :  { %v255_v38 = vpop.f32.mrf.mxu3 }
  0xb3   :  { %v206_v39 = vpop.f32.mrf.mxu0 }
  0xb4   :  { %v229_v40 = vpop.f32.mrf.mxu1 }
  0xb5   :  { %v230_v41 = vadd.f32 %v229_v40, %v206_v39  ;;  %v281_v43 = vpop.f32.mrf.mxu3 }
  0xb7   :  { %v258_v42 = vadd.f32 %v255_v38, %v230_v41 }
  0xb9   :  { %v284_v45 = vadd.f32 %v281_v43, %v258_v42 }
  0xbb   :  { %v289_v46 = vadd.f32 %v370_v44, %v284_v45 }
  0xbd   :  { %v290_v47 = vmax.f32 %v289_v46, 0.0 }
  0xbf   :  { %327 = vmatmul.f32.vlgmr.msra.gmra.mxu2 %v290_v47 }
 0x142   :  { %v328_v49 = vpop.f32.mrf.mxu2 }
 0x143   :  { %v329_v50 = vadd.f32 %v371_v48, %v328_v49 }
 0x145   :  { %v331_v51 = vmax.f32 %v329_v50, 0.0 }
 0x147   :  { %332 = vst [vmem:[#allocation17] sm:$0xff] %v331_v51 }
 0x148   :  { %343 = dma.vmem_to_hbm [thread:$0]  %s339_s5, 128, %s341_s7, [#allocation4]  }
 0x149   :  { %622 = dma.done.wait [#allocation4], 128  }
 0x14a   :  { %623 = vsyncadd [#allocation4], 4294967168 }
 0x14b   :  { %348 = vsyncpa [#allocation3], 1 }
 0x14c   :  { %349 = vsyncpa [#allocation6], 1 }
 0x14d   :  { %350 = vsyncpa [#allocation9], 1 }
 0x14e   :  { %351 = vsyncpa [#allocation12], 1 }
 0x14f   :  { %352 = vsyncpa [#allocation15], 1 }
 0x150   :  { %353 = vsyncpa [#allocation4], 1 }

</bundles_post_ra>
